<compile_context>
chip_gen: v5e
topology: v5e:2x2
jax: 0.10.0
libtpu: 0.0.40
codegen_flags: <defaults>
</compile_context>

<pallas_src>
import jax
import jax.numpy as jnp
from jax.experimental import pallas as pl
from jax.experimental.pallas import tpu as pltpu

N_POINTS = 10
LEFT = -1.0
RIGHT = 1.0
LANES = 128
SUBLANE_PAD = 16         # rows padded to a multiple of this (covers f32/bf16 tiling)
MAX_BLOCK_ROWS = 1024    # (1024, 128) f32 block = 512 KiB; double-buffered ~2 MiB VMEM


def _piecewise_kernel(xs_ref, m_ref, b_ref, x_ref, o_ref):
    # xs_ref: SMEM (n,) sorted breakpoints.
    # m_ref / b_ref: SMEM (n+1,) per-region slope / intercept tables:
    #   region 0   : x <  xs[0]            (left extrapolation)
    #   region j+1 : xs[j] <= x < xs[j+1]  (interior segment j)
    #   region n   : x >= xs[n-1]          (right extrapolation)
    # x_ref / o_ref: VMEM (TM, 128) tiles in the caller's dtype.
    x = x_ref[...].astype(jnp.float32)
    n = xs_ref.shape[0]

    # xs is sorted: a forward select-scan picks, per element, the region of the
    # rightmost breakpoint <= x (region 0 when x < xs[0]).  Fully unrolled,
    # VPU-only: 1 cmp + 2 selects per breakpoint.
    m = jnp.where(x >= xs_ref[0], m_ref[1], m_ref[0])
    b = jnp.where(x >= xs_ref[0], b_ref[1], b_ref[0])
    for j in range(1, n):
        upd = x >= xs_ref[j]
        m = jnp.where(upd, m_ref[j + 1], m)
        b = jnp.where(upd, b_ref[j + 1], b)

    o_ref[...] = (m * x + b).astype(o_ref.dtype)   # covers interior + both tails


def piecewise_activation(x, xs, ys, slopes):
    """Elementwise piecewise-linear activation; preserves x's shape and dtype."""
    in_shape = x.shape

    # Scalar tables, computed once; they live in SMEM for the whole grid.
    xs32 = xs.astype(jnp.float32)
    ys32 = ys.astype(jnp.float32)
    sl32 = slopes.astype(jnp.float32)
    seg_slopes = (ys32[1:] - ys32[:-1]) / (xs32[1:] - xs32[:-1])        # (n-1,)
    mtab = jnp.concatenate([sl32[:1], seg_slopes, sl32[1:]])            # (n+1,)
    # Anchor point of each region: (xs[0],ys[0]) for the left tail, (xs[j],ys[j])
    # for interior segment j, (xs[-1],ys[-1]) for the right tail.
    anchor_x = jnp.concatenate([xs32[:1], xs32[:-1], xs32[-1:]])        # (n+1,)
    anchor_y = jnp.concatenate([ys32[:1], ys32[:-1], ys32[-1:]])        # (n+1,)
    btab = anchor_y - mtab * anchor_x                                   # (n+1,)

    xf = x.reshape(-1)
    n_elem = xf.shape[0]
    tile = SUBLANE_PAD * LANES
    n_pad = pl.cdiv(n_elem, tile) * tile
    if n_pad != n_elem:                  # static-shape decision; no-op for nice shapes
        xf = jnp.pad(xf, (0, n_pad - n_elem))
    rows = n_pad // LANES
    x2d = xf.reshape(rows, LANES)        # lane-dense 2-D slab in native dtype

    tm = min(MAX_BLOCK_ROWS, rows)
    grid = (pl.cdiv(rows, tm),)

    out2d = pl.pallas_call(
        _piecewise_kernel,
        out_shape=jax.ShapeDtypeStruct((rows, LANES), x.dtype),
        grid_spec=pltpu.PrefetchScalarGridSpec(
            num_scalar_prefetch=3,       # xs, mtab, btab -> SMEM once for whole grid
            grid=grid,
            in_specs=[pl.BlockSpec((tm, LANES), lambda i, *_: (i, 0))],
            out_specs=pl.BlockSpec((tm, LANES), lambda i, *_: (i, 0)),
        ),
        compiler_params=pltpu.CompilerParams(
            dimension_semantics=("parallel",),   # shard blocks across TCs (v7x megacore)
        ),
    )(xs32, mtab, btab, x2d)

    out = out2d.reshape(-1)
    if n_pad != n_elem:
        out = out[:n_elem]
    return out.reshape(in_shape)


def ref_forward(x, xs, ys, slopes):
    # Pure-JAX reference matching the PyTorch forward exactly.
    in_shape = x.shape
    xf = x.reshape(-1)
    diff = xf[:, None] - xs[None, :]
    left = jnp.argmin(jnp.where(diff >= 0, diff, jnp.inf), axis=1)
    right = jnp.argmax(jnp.where(diff < 0, diff, -jnp.inf), axis=1)
    gap = xs[right] - xs[left]
    out = ys[left] + (xf - xs[left]) * (ys[right] - ys[left]) / jnp.where(
        gap == 0.0, jnp.ones_like(gap), gap)
    out = jnp.where(xf <= xs[0], ys[0] - (xs[0] - xf) * slopes[0], out)
    out = jnp.where(xf >= xs[-1], ys[-1] + (xf - xs[-1]) * slopes[1], out)
    return out.reshape(in_shape)


if __name__ == "__main__":
    key = jax.random.PRNGKey(0)
    k_ys, k_x = jax.random.split(key)

    # Deterministic "parameters" matching the module __init__ shapes.
    xs = jnp.linspace(LEFT, RIGHT, N_POINTS).astype(jnp.float32)          # buffer
    slopes = jnp.array([0.0, 1.0], dtype=jnp.float32)                     # Parameter
    scale = (RIGHT - LEFT) / (N_POINTS - 1)
    ys = jnp.cumsum(jax.random.normal(k_ys, (N_POINTS,)) * scale).astype(jnp.float32)

    # Example input (NCHW-like, values spanning beyond [left, right]).
    x = (2.0 * jax.random.normal(k_x, (2, 4, 16, 16))).astype(jnp.float32)

    fn = jax.jit(piecewise_activation)
    out = jax.block_until_ready(fn(x, xs, ys, slopes))

    ref = ref_forward(x, xs, ys, slopes)
    assert out.shape == x.shape and out.dtype == x.dtype
    assert jnp.allclose(out, ref, atol=1e-5, rtol=1e-5), "mismatch vs reference"

    print("KERNEL_OK")
</pallas_src>

<mosaic_0001>
module attributes {stable_mosaic.version = 11 : i64} {
  func.func @_piecewise_kernel(%arg0: i32, %arg1: memref<10xf32, #tpu.memory_space<smem>>, %arg2: memref<11xf32, #tpu.memory_space<smem>>, %arg3: memref<11xf32, #tpu.memory_space<smem>>, %arg4: memref<16x128xf32, #tpu.memory_space<vmem>>, %arg5: memref<16x128xf32, #tpu.memory_space<vmem>>) attributes {dimension_semantics = [#tpu.dimension_semantics<parallel>], iteration_bounds = array<i64: 1>, scalar_prefetch = 3 : i64, scratch_operands = 0 : i64, tpu.core_type = #tpu.core_type<tc>, window_params = [{transform_indices = @transform_0, window_bounds = array<i64: 16, 128>}, {transform_indices = @transform_1, window_bounds = array<i64: 16, 128>}]} {
    %c0 = arith.constant 0 : index
    %c0_0 = arith.constant 0 : index
    %0 = vector.load %arg4[%c0, %c0_0] : memref<16x128xf32, #tpu.memory_space<vmem>>, vector<16x128xf32>
    %c0_1 = arith.constant 0 : index
    %1 = memref.load %arg1[%c0_1] : memref<10xf32, #tpu.memory_space<smem>>
    %2 = vector.broadcast %1 : f32 to vector<16x128xf32>
    %3 = arith.cmpf oge, %0, %2 : vector<16x128xf32>
    %c1 = arith.constant 1 : index
    %4 = memref.load %arg2[%c1] : memref<11xf32, #tpu.memory_space<smem>>
    %c0_2 = arith.constant 0 : index
    %5 = memref.load %arg2[%c0_2] : memref<11xf32, #tpu.memory_space<smem>>
    %6 = vector.broadcast %4 : f32 to vector<16x128xf32>
    %7 = vector.broadcast %5 : f32 to vector<16x128xf32>
    %8 = arith.select %3, %6, %7 : vector<16x128xi1>, vector<16x128xf32>
    %c0_3 = arith.constant 0 : index
    %9 = memref.load %arg1[%c0_3] : memref<10xf32, #tpu.memory_space<smem>>
    %10 = vector.broadcast %9 : f32 to vector<16x128xf32>
    %11 = arith.cmpf oge, %0, %10 : vector<16x128xf32>
    %c1_4 = arith.constant 1 : index
    %12 = memref.load %arg3[%c1_4] : memref<11xf32, #tpu.memory_space<smem>>
    %c0_5 = arith.constant 0 : index
    %13 = memref.load %arg3[%c0_5] : memref<11xf32, #tpu.memory_space<smem>>
    %14 = vector.broadcast %12 : f32 to vector<16x128xf32>
    %15 = vector.broadcast %13 : f32 to vector<16x128xf32>
    %16 = arith.select %11, %14, %15 : vector<16x128xi1>, vector<16x128xf32>
    %c1_6 = arith.constant 1 : index
    %17 = memref.load %arg1[%c1_6] : memref<10xf32, #tpu.memory_space<smem>>
    %18 = vector.broadcast %17 : f32 to vector<16x128xf32>
    %19 = arith.cmpf oge, %0, %18 : vector<16x128xf32>
    %c2 = arith.constant 2 : index
    %20 = memref.load %arg2[%c2] : memref<11xf32, #tpu.memory_space<smem>>
    %21 = vector.broadcast %20 : f32 to vector<16x128xf32>
    %22 = arith.select %19, %21, %8 : vector<16x128xi1>, vector<16x128xf32>
    %c2_7 = arith.constant 2 : index
    %23 = memref.load %arg3[%c2_7] : memref<11xf32, #tpu.memory_space<smem>>
    %24 = vector.broadcast %23 : f32 to vector<16x128xf32>
    %25 = arith.select %19, %24, %16 : vector<16x128xi1>, vector<16x128xf32>
    %c2_8 = arith.constant 2 : index
    %26 = memref.load %arg1[%c2_8] : memref<10xf32, #tpu.memory_space<smem>>
    %27 = vector.broadcast %26 : f32 to vector<16x128xf32>
    %28 = arith.cmpf oge, %0, %27 : vector<16x128xf32>
    %c3 = arith.constant 3 : index
    %29 = memref.load %arg2[%c3] : memref<11xf32, #tpu.memory_space<smem>>
    %30 = vector.broadcast %29 : f32 to vector<16x128xf32>
    %31 = arith.select %28, %30, %22 : vector<16x128xi1>, vector<16x128xf32>
    %c3_9 = arith.constant 3 : index
    %32 = memref.load %arg3[%c3_9] : memref<11xf32, #tpu.memory_space<smem>>
    %33 = vector.broadcast %32 : f32 to vector<16x128xf32>
    %34 = arith.select %28, %33, %25 : vector<16x128xi1>, vector<16x128xf32>
    %c3_10 = arith.constant 3 : index
    %35 = memref.load %arg1[%c3_10] : memref<10xf32, #tpu.memory_space<smem>>
    %36 = vector.broadcast %35 : f32 to vector<16x128xf32>
    %37 = arith.cmpf oge, %0, %36 : vector<16x128xf32>
    %c4 = arith.constant 4 : index
    %38 = memref.load %arg2[%c4] : memref<11xf32, #tpu.memory_space<smem>>
    %39 = vector.broadcast %38 : f32 to vector<16x128xf32>
    %40 = arith.select %37, %39, %31 : vector<16x128xi1>, vector<16x128xf32>
    %c4_11 = arith.constant 4 : index
    %41 = memref.load %arg3[%c4_11] : memref<11xf32, #tpu.memory_space<smem>>
    %42 = vector.broadcast %41 : f32 to vector<16x128xf32>
    %43 = arith.select %37, %42, %34 : vector<16x128xi1>, vector<16x128xf32>
    %c4_12 = arith.constant 4 : index
    %44 = memref.load %arg1[%c4_12] : memref<10xf32, #tpu.memory_space<smem>>
    %45 = vector.broadcast %44 : f32 to vector<16x128xf32>
    %46 = arith.cmpf oge, %0, %45 : vector<16x128xf32>
    %c5 = arith.constant 5 : index
    %47 = memref.load %arg2[%c5] : memref<11xf32, #tpu.memory_space<smem>>
    %48 = vector.broadcast %47 : f32 to vector<16x128xf32>
    %49 = arith.select %46, %48, %40 : vector<16x128xi1>, vector<16x128xf32>
    %c5_13 = arith.constant 5 : index
    %50 = memref.load %arg3[%c5_13] : memref<11xf32, #tpu.memory_space<smem>>
    %51 = vector.broadcast %50 : f32 to vector<16x128xf32>
    %52 = arith.select %46, %51, %43 : vector<16x128xi1>, vector<16x128xf32>
    %c5_14 = arith.constant 5 : index
    %53 = memref.load %arg1[%c5_14] : memref<10xf32, #tpu.memory_space<smem>>
    %54 = vector.broadcast %53 : f32 to vector<16x128xf32>
    %55 = arith.cmpf oge, %0, %54 : vector<16x128xf32>
    %c6 = arith.constant 6 : index
    %56 = memref.load %arg2[%c6] : memref<11xf32, #tpu.memory_space<smem>>
    %57 = vector.broadcast %56 : f32 to vector<16x128xf32>
    %58 = arith.select %55, %57, %49 : vector<16x128xi1>, vector<16x128xf32>
    %c6_15 = arith.constant 6 : index
    %59 = memref.load %arg3[%c6_15] : memref<11xf32, #tpu.memory_space<smem>>
    %60 = vector.broadcast %59 : f32 to vector<16x128xf32>
    %61 = arith.select %55, %60, %52 : vector<16x128xi1>, vector<16x128xf32>
    %c6_16 = arith.constant 6 : index
    %62 = memref.load %arg1[%c6_16] : memref<10xf32, #tpu.memory_space<smem>>
    %63 = vector.broadcast %62 : f32 to vector<16x128xf32>
    %64 = arith.cmpf oge, %0, %63 : vector<16x128xf32>
    %c7 = arith.constant 7 : index
    %65 = memref.load %arg2[%c7] : memref<11xf32, #tpu.memory_space<smem>>
    %66 = vector.broadcast %65 : f32 to vector<16x128xf32>
    %67 = arith.select %64, %66, %58 : vector<16x128xi1>, vector<16x128xf32>
    %c7_17 = arith.constant 7 : index
    %68 = memref.load %arg3[%c7_17] : memref<11xf32, #tpu.memory_space<smem>>
    %69 = vector.broadcast %68 : f32 to vector<16x128xf32>
    %70 = arith.select %64, %69, %61 : vector<16x128xi1>, vector<16x128xf32>
    %c7_18 = arith.constant 7 : index
    %71 = memref.load %arg1[%c7_18] : memref<10xf32, #tpu.memory_space<smem>>
    %72 = vector.broadcast %71 : f32 to vector<16x128xf32>
    %73 = arith.cmpf oge, %0, %72 : vector<16x128xf32>
    %c8 = arith.constant 8 : index
    %74 = memref.load %arg2[%c8] : memref<11xf32, #tpu.memory_space<smem>>
    %75 = vector.broadcast %74 : f32 to vector<16x128xf32>
    %76 = arith.select %73, %75, %67 : vector<16x128xi1>, vector<16x128xf32>
    %c8_19 = arith.constant 8 : index
    %77 = memref.load %arg3[%c8_19] : memref<11xf32, #tpu.memory_space<smem>>
    %78 = vector.broadcast %77 : f32 to vector<16x128xf32>
    %79 = arith.select %73, %78, %70 : vector<16x128xi1>, vector<16x128xf32>
    %c8_20 = arith.constant 8 : index
    %80 = memref.load %arg1[%c8_20] : memref<10xf32, #tpu.memory_space<smem>>
    %81 = vector.broadcast %80 : f32 to vector<16x128xf32>
    %82 = arith.cmpf oge, %0, %81 : vector<16x128xf32>
    %c9 = arith.constant 9 : index
    %83 = memref.load %arg2[%c9] : memref<11xf32, #tpu.memory_space<smem>>
    %84 = vector.broadcast %83 : f32 to vector<16x128xf32>
    %85 = arith.select %82, %84, %76 : vector<16x128xi1>, vector<16x128xf32>
    %c9_21 = arith.constant 9 : index
    %86 = memref.load %arg3[%c9_21] : memref<11xf32, #tpu.memory_space<smem>>
    %87 = vector.broadcast %86 : f32 to vector<16x128xf32>
    %88 = arith.select %82, %87, %79 : vector<16x128xi1>, vector<16x128xf32>
    %c9_22 = arith.constant 9 : index
    %89 = memref.load %arg1[%c9_22] : memref<10xf32, #tpu.memory_space<smem>>
    %90 = vector.broadcast %89 : f32 to vector<16x128xf32>
    %91 = arith.cmpf oge, %0, %90 : vector<16x128xf32>
    %c10 = arith.constant 10 : index
    %92 = memref.load %arg2[%c10] : memref<11xf32, #tpu.memory_space<smem>>
    %93 = vector.broadcast %92 : f32 to vector<16x128xf32>
    %94 = arith.select %91, %93, %85 : vector<16x128xi1>, vector<16x128xf32>
    %c10_23 = arith.constant 10 : index
    %95 = memref.load %arg3[%c10_23] : memref<11xf32, #tpu.memory_space<smem>>
    %96 = vector.broadcast %95 : f32 to vector<16x128xf32>
    %97 = arith.select %91, %96, %88 : vector<16x128xi1>, vector<16x128xf32>
    %98 = arith.mulf %94, %0 : vector<16x128xf32>
    %99 = arith.addf %98, %97 : vector<16x128xf32>
    %c0_24 = arith.constant 0 : index
    %c0_25 = arith.constant 0 : index
    %100 = vector.load %arg5[%c0_24, %c0_25] : memref<16x128xf32, #tpu.memory_space<vmem>>, vector<16x128xf32>
    tpu.vector_store %arg5[%c0_24, %c0_25], %99 {strides = array<i32>} : memref<16x128xf32, #tpu.memory_space<vmem>>, vector<16x128xf32>,
    return
  }
  func.func @transform_0(%arg0: i32, %arg1: memref<10xf32, #tpu.memory_space<smem>>, %arg2: memref<11xf32, #tpu.memory_space<smem>>, %arg3: memref<11xf32, #tpu.memory_space<smem>>) -> (i32, i32) {
    %c0_i32 = arith.constant 0 : i32
    %c0_i32_0 = arith.constant 0 : i32
    return %arg0, %c0_i32 : i32, i32
  }
  func.func @transform_1(%arg0: i32, %arg1: memref<10xf32, #tpu.memory_space<smem>>, %arg2: memref<11xf32, #tpu.memory_space<smem>>, %arg3: memref<11xf32, #tpu.memory_space<smem>>) -> (i32, i32) {
    %c0_i32 = arith.constant 0 : i32
    %c0_i32_0 = arith.constant 0 : i32
    return %arg0, %c0_i32 : i32, i32
  }
}

</mosaic_0001>

<bundles_post_ra>
// kernel: piecewise_activation.1
= control target key start
LH: loop header
LB: loop body
LE: loop exit
PB: predicated region body
PF: predicated region fallthrough
CT: control target
= control target key end

     0   :  { %s235_s21 = smov [#allocation3]   ;;  %s236_s22 = smov [#allocation4]   ;;  %s310_s0 = inlined_call_operand.vmem [shape: f32[10], index: 0, kind: input, shape index: {}]   ;;  %s311_s3 = inlined_call_operand.vmem [shape: f32[16,128], index: 3, kind: input, shape index: {}]   ;;  %s312_s4 = inlined_call_operand.vmem [shape: f32[16,128], index: 4, kind: output, shape index: {}]   ;;  %s313_s1 = inlined_call_operand.vmem [shape: f32[11], index: 1, kind: input, shape index: {}]   ;;  %s314_s2 = inlined_call_operand.vmem [shape: f32[11], index: 2, kind: input, shape index: {}]  }
   0x1   :  { %s10_s17 = sshll.u32 %s310_s0, 4  ;;  %s15_s20 = sshll.u32 %s313_s1, 4  ;;  %s11_s17 = int_to_ptr.vmem [resolvable:$true] %s10_s17  ;;  %s16_s20 = int_to_ptr.vmem [resolvable:$true] %s15_s20 }
   0x2   :  { %13 = dma.vmem_to_smem %s11_s17, 16, %s235_s21, [#allocation2] }
   0x3   :  { %18 = dma.vmem_to_smem %s16_s20, 16, %s236_s22, [#allocation2] }
   0x4   :  { %s20_s25 = sshll.u32 %s314_s2, 4  ;;  %s237_s26 = smov [#allocation5]   ;;  %s21_s25 = int_to_ptr.vmem [resolvable:$true] %s20_s25 }
   0x5   :  { %23 = dma.vmem_to_smem %s21_s25, 16, %s237_s26, [#allocation2] }
   0x6   :  { %233 = dma.done.wait [#allocation2], 48 }
   0x7   :  { %234 = vsyncadd [#allocation2], 4294967248 }
   0x8   :  { %26 = sfence }
   0x9   :  { %s31_s0 = sld [smem:[#allocation3]]  ;;  %v275_v0 = vld [vmem:[%s311_s3] sm:$0xff]  ;;  %v280_v1 = vld [vmem:[%s311_s3 + $0x8] sm:$0xff] }
   0xa   :  { %s165_s27 = sld [smem:[#allocation4 + $0x1]] }
   0xb   :  { %s36_s28 = sld [smem:[#allocation4]] }
   0xc   :  { %s166_s1 = sld [smem:[#allocation5 + $0x1]] }
   0xd   :  { %s42_s2 = sld [smem:[#allocation5]] }
   0xe   :  { %s167_s7 = sld [smem:[#allocation3 + $0x1]] }
   0xf   :  { %v32_v2 = vstv %s31_s0  ;;  %s168_s8 = sld [smem:[#allocation4 + $0x2]] }
  0x10   :  { %vm33_vm0 = vcmp.ge.f32.partialorder %v275_v0, %v32_v2  ;;  %vm34_vm1 = vcmp.ge.f32.partialorder %v280_v1, %v32_v2  ;;  %v37_v3 = vstv %s165_s27  ;;  %s169_s9 = sld [smem:[#allocation5 + $0x2]] }
  0x11   :  { %v38_v4 = vstv %s36_s28  ;;  %s170_s10 = sld [smem:[#allocation3 + $0x2]] }
  0x12   :  { %v43_v5 = vstv %s166_s1  ;;  %s171_s11 = sld [smem:[#allocation4 + $0x3]]  ;;  %v39_v6 = vsel %vm33_vm0, %v37_v3, %v38_v4  ;;  %v40_v7 = vsel %vm34_vm1, %v37_v3, %v38_v4 }
  0x13   :  { %v44_v8 = vstv %s42_s2  ;;  %s172_s12 = sld [smem:[#allocation5 + $0x3]] }
  0x14   :  { %v45_v9 = vsel %vm33_vm0, %v43_v5, %v44_v8  ;;  %v46_v10 = vsel %vm34_vm1, %v43_v5, %v44_v8  ;;  %v48_v11 = vstv %s167_s7  ;;  %s173_s3 = sld [smem:[#allocation3 + $0x3]] }
  0x15   :  { %vm49_vm2 = vcmp.ge.f32.partialorder %v275_v0, %v48_v11  ;;  %vm50_vm3 = vcmp.ge.f32.partialorder %v280_v1, %v48_v11  ;;  %v52_v12 = vstv %s168_s8  ;;  %s174_s13 = sld [smem:[#allocation4 + $0x4]] }
  0x16   :  { %v53_v13 = vsel %vm49_vm2, %v52_v12, %v39_v6  ;;  %v54_v14 = vsel %vm50_vm3, %v52_v12, %v40_v7  ;;  %v56_v15 = vstv %s169_s9  ;;  %s175_s14 = sld [smem:[#allocation5 + $0x4]] }
  0x17   :  { %v57_v16 = vsel %vm49_vm2, %v56_v15, %v45_v9  ;;  %v58_v17 = vsel %vm50_vm3, %v56_v15, %v46_v10  ;;  %v60_v18 = vstv %s170_s10  ;;  %s176_s15 = sld [smem:[#allocation3 + $0x4]] }
  0x18   :  { %vm61_vm4 = vcmp.ge.f32.partialorder %v275_v0, %v60_v18  ;;  %vm62_vm5 = vcmp.ge.f32.partialorder %v280_v1, %v60_v18  ;;  %v64_v19 = vstv %s171_s11  ;;  %s177_s16 = sld [smem:[#allocation4 + $0x5]] }
  0x19   :  { %v65_v20 = vsel %vm61_vm4, %v64_v19, %v53_v13  ;;  %v66_v21 = vsel %vm62_vm5, %v64_v19, %v54_v14  ;;  %v68_v22 = vstv %s172_s12  ;;  %s178_s17 = sld [smem:[#allocation5 + $0x5]] }
  0x1a   :  { %v69_v23 = vsel %vm61_vm4, %v68_v22, %v57_v16  ;;  %v70_v24 = vsel %vm62_vm5, %v68_v22, %v58_v17  ;;  %v72_v25 = vstv %s173_s3  ;;  %s179_s18 = sld [smem:[#allocation3 + $0x5]] }
  0x1b   :  { %vm73_vm6 = vcmp.ge.f32.partialorder %v275_v0, %v72_v25  ;;  %vm74_vm7 = vcmp.ge.f32.partialorder %v280_v1, %v72_v25  ;;  %v76_v26 = vstv %s174_s13  ;;  %s180_s19 = sld [smem:[#allocation4 + $0x6]] }
  0x1c   :  { %v77_v27 = vsel %vm73_vm6, %v76_v26, %v65_v20  ;;  %v78_v28 = vsel %vm74_vm7, %v76_v26, %v66_v21  ;;  %v80_v29 = vstv %s175_s14  ;;  %s181_s20 = sld [smem:[#allocation5 + $0x6]] }
  0x1d   :  { %v81_v30 = vsel %vm73_vm6, %v80_v29, %v69_v23  ;;  %v82_v31 = vsel %vm74_vm7, %v80_v29, %v70_v24  ;;  %v84_v32 = vstv %s176_s15  ;;  %s182_s21 = sld [smem:[#allocation3 + $0x6]] }
  0x1e   :  { %vm85_vm8 = vcmp.ge.f32.partialorder %v275_v0, %v84_v32  ;;  %vm86_vm9 = vcmp.ge.f32.partialorder %v280_v1, %v84_v32  ;;  %v88_v33 = vstv %s177_s16  ;;  %s183_s22 = sld [smem:[#allocation4 + $0x7]] }
  0x1f   :  { %v89_v34 = vsel %vm85_vm8, %v88_v33, %v77_v27  ;;  %v90_v35 = vsel %vm86_vm9, %v88_v33, %v78_v28  ;;  %v92_v36 = vstv %s178_s17  ;;  %s184_s23 = sld [smem:[#allocation5 + $0x7]] }
  0x20   :  { %v93_v37 = vsel %vm85_vm8, %v92_v36, %v81_v30  ;;  %v94_v38 = vsel %vm86_vm9, %v92_v36, %v82_v31  ;;  %v96_v39 = vstv %s179_s18  ;;  %s185_s24 = sld [smem:[#allocation3 + $0x7]] }
  0x21   :  { %vm97_vm10 = vcmp.ge.f32.partialorder %v275_v0, %v96_v39  ;;  %vm98_vm11 = vcmp.ge.f32.partialorder %v280_v1, %v96_v39  ;;  %v100_v40 = vstv %s180_s19  ;;  %s186_s25 = sld [smem:[#allocation4 + $0x8]] }
  0x22   :  { %v101_v41 = vsel %vm97_vm10, %v100_v40, %v89_v34  ;;  %v102_v42 = vsel %vm98_vm11, %v100_v40, %v90_v35  ;;  %v104_v43 = vstv %s181_s20  ;;  %s187_s26 = sld [smem:[#allocation5 + $0x8]] }
  0x23   :  { %v105_v44 = vsel %vm97_vm10, %v104_v43, %v93_v37  ;;  %v106_v45 = vsel %vm98_vm11, %v104_v43, %v94_v38  ;;  %v108_v46 = vstv %s182_s21  ;;  %s188_s0 = sld [smem:[#allocation3 + $0x8]] }
  0x24   :  { %vm109_vm12 = vcmp.ge.f32.partialorder %v275_v0, %v108_v46  ;;  %vm110_vm13 = vcmp.ge.f32.partialorder %v280_v1, %v108_v46  ;;  %v112_v47 = vstv %s183_s22  ;;  %s189_s27 = sld [smem:[#allocation4 + $0x9]] }
  0x25   :  { %v113_v48 = vsel %vm109_vm12, %v112_v47, %v101_v41  ;;  %v114_v49 = vsel %vm110_vm13, %v112_v47, %v102_v42  ;;  %v116_v50 = vstv %s184_s23  ;;  %s190_s28 = sld [smem:[#allocation5 + $0x9]] }
  0x26   :  { %v117_v51 = vsel %vm109_vm12, %v116_v50, %v105_v44  ;;  %v118_v52 = vsel %vm110_vm13, %v116_v50, %v106_v45  ;;  %v120_v53 = vstv %s185_s24  ;;  %s191_s1 = sld [smem:[#allocation3 + $0x9]] }
  0x27   :  { %vm121_vm14 = vcmp.ge.f32.partialorder %v275_v0, %v120_v53  ;;  %vm122_vm15 = vcmp.ge.f32.partialorder %v280_v1, %v120_v53  ;;  %v124_v54 = vstv %s186_s25  ;;  %s192_s29 = sld [smem:[#allocation4 + $0xa]] }
  0x28   :  { %v125_v55 = vsel %vm121_vm14, %v124_v54, %v113_v48  ;;  %v126_v56 = vsel %vm122_vm15, %v124_v54, %v114_v49  ;;  %v128_v57 = vstv %s187_s26  ;;  %s193_s30 = sld [smem:[#allocation5 + $0xa]] }
  0x29   :  { %v129_v58 = vsel %vm121_vm14, %v128_v57, %v117_v51  ;;  %v130_v59 = vsel %vm122_vm15, %v128_v57, %v118_v52  ;;  %v132_v60 = vstv %s188_s0 }
  0x2a   :  { %vm133_vm0 = vcmp.ge.f32.partialorder %v275_v0, %v132_v60  ;;  %vm134_vm1 = vcmp.ge.f32.partialorder %v280_v1, %v132_v60  ;;  %v136_v61 = vstv %s189_s27 }
  0x2b   :  { %v137_v62 = vsel %vm133_vm0, %v136_v61, %v125_v55  ;;  %v138_v63 = vsel %vm134_vm1, %v136_v61, %v126_v56  ;;  %v140_v2 = vstv %s190_s28 }
  0x2c   :  { %v141_v3 = vsel %vm133_vm0, %v140_v2, %v129_v58  ;;  %v142_v4 = vsel %vm134_vm1, %v140_v2, %v130_v59  ;;  %v144_v5 = vstv %s191_s1 }
  0x2d   :  { %vm145_vm2 = vcmp.ge.f32.partialorder %v275_v0, %v144_v5  ;;  %vm146_vm3 = vcmp.ge.f32.partialorder %v280_v1, %v144_v5  ;;  %v148_v6 = vstv %s192_s29 }
  0x2e   :  { %v149_v7 = vsel %vm145_vm2, %v148_v6, %v137_v62  ;;  %v150_v8 = vsel %vm146_vm3, %v148_v6, %v138_v63  ;;  %v152_v9 = vstv %s193_s30 }
  0x2f   :  { %v153_v10 = vsel %vm145_vm2, %v152_v9, %v141_v3  ;;  %v154_v11 = vsel %vm146_vm3, %v152_v9, %v142_v4  ;;  %v155_v12 = vmul.f32 %v149_v7, %v275_v0  ;;  %v156_v13 = vmul.f32 %v150_v8, %v280_v1 }
  0x31   :  { %v157_v14 = vadd.f32 %v155_v12, %v153_v10  ;;  %v158_v15 = vadd.f32 %v156_v13, %v154_v11 }
  0x33   :  { %159 = vst [vmem:[%s312_s4] sm:$0xff] %v157_v14 }
  0x34   :  { %160 = vst [vmem:[%s312_s4 + $0x8] sm:$0xff] %v158_v15 }

</bundles_post_ra>
